<compile_context>
chip_gen: v7x
topology: tpu7x:2x2x1
jax: 0.10.0
libtpu: 0.0.40
codegen_flags: <defaults>
</compile_context>

<pallas_src>
import jax
import jax.numpy as jnp
from jax.experimental import pallas as pl
from jax.experimental.pallas import tpu as pltpu

EPS = 1e-5
LANE = 128      # TPU lane width: head output padded to this for dense stores
SLAB_F = 256    # widest feature dim; per-feature params packed to this width


def _bn_relu_fold(y, gamma, beta):
    """Training-mode BatchNorm1d + ReLU, folded to 1 mul + 1 add per element.

    y: (B, F) f32 matmul output. gamma/beta: (1, F) f32.
    """
    mu = jnp.mean(y, axis=0, keepdims=True)
    var = jnp.mean(y * y, axis=0, keepdims=True) - mu * mu   # biased (1/N) var
    scale = gamma * jax.lax.rsqrt(var + EPS)                  # EUP rsqrt
    shift = beta - mu * scale
    return jnp.maximum(y * scale + shift, 0.0)


def qfunction_kernel(x_ref, w1_ref, w2_ref, w3_ref, w4_ref, slab_ref, out_ref):
    # Per-feature parameter slab, (8, 256) f32:
    #   row 0/1: bn1 gamma/beta  (first  32 lanes valid)
    #   row 2/3: bn2 gamma/beta  (first 128 lanes valid)
    #   row 4/5: bn3 gamma/beta  (256 lanes valid)
    #   row 6  : fc4 bias, zero-padded to 128 lanes
    slab = slab_ref[...]
    g1, be1 = slab[0:1, 0:32],  slab[1:2, 0:32]
    g2, be2 = slab[2:3, 0:128], slab[3:4, 0:128]
    g3, be3 = slab[4:5, 0:256], slab[5:6, 0:256]
    b4 = slab[6:7, 0:LANE]

    x = x_ref[...]                                            # bf16 (B, obs)

    # fc1 -> bn1 -> relu  (fc bias omitted: exactly cancelled by BN mean sub)
    h = jnp.dot(x, w1_ref[...], preferred_element_type=jnp.float32)
    h = _bn_relu_fold(h, g1, be1)

    # fc2 -> bn2 -> relu
    h = jnp.dot(h.astype(jnp.bfloat16), w2_ref[...],
                preferred_element_type=jnp.float32)
    h = _bn_relu_fold(h, g2, be2)

    # fc3 -> bn3 -> relu
    h = jnp.dot(h.astype(jnp.bfloat16), w3_ref[...],
                preferred_element_type=jnp.float32)
    h = _bn_relu_fold(h, g3, be3)

    # fc4 head, N padded to 128 -> lane-dense MXU shape and unmasked store
    q = jnp.dot(h.astype(jnp.bfloat16), w4_ref[...],
                preferred_element_type=jnp.float32) + b4
    out_ref[...] = q.astype(out_ref.dtype)


def _pack_params(params, n_actions):
    """Cast weights to bf16 and pack the small per-feature params into one slab."""
    w1 = params["w1"].astype(jnp.bfloat16)
    w2 = params["w2"].astype(jnp.bfloat16)
    w3 = params["w3"].astype(jnp.bfloat16)
    w4p = jnp.zeros((256, LANE), jnp.float32)
    w4p = w4p.at[:, :n_actions].set(params["w4"]).astype(jnp.bfloat16)

    slab = jnp.zeros((8, SLAB_F), jnp.float32)
    slab = slab.at[0, :32].set(params["g1"][0])
    slab = slab.at[1, :32].set(params["be1"][0])
    slab = slab.at[2, :128].set(params["g2"][0])
    slab = slab.at[3, :128].set(params["be2"][0])
    slab = slab.at[4, :256].set(params["g3"][0])
    slab = slab.at[5, :256].set(params["be3"][0])
    slab = slab.at[6, :n_actions].set(params["b4"][0])
    return w1, w2, w3, w4p, slab


def qfunction_forward(x, params, n_actions):
    """x: (B, obs_size) f32. Returns (B, n_actions) f32 Q-values."""
    B = x.shape[0]
    w1, w2, w3, w4p, slab = _pack_params(params, n_actions)
    vmem = pl.BlockSpec(memory_space=pltpu.MemorySpace.VMEM)

    q_pad = pl.pallas_call(
        qfunction_kernel,
        out_shape=jax.ShapeDtypeStruct((B, LANE), jnp.float32),
        in_specs=[vmem] * 6,
        out_specs=vmem,
    )(x.astype(jnp.bfloat16), w1, w2, w3, w4p, slab)

    return q_pad[:, :n_actions]


def init_params(key, obs_size, n_actions):
    dims = [(obs_size, 32), (32, 128), (128, 256), (256, n_actions)]
    params = {}
    keys = jax.random.split(key, 2 * len(dims))
    for i, (din, dout) in enumerate(dims):
        kw, kb = keys[2 * i], keys[2 * i + 1]
        bound = 1.0 / jnp.sqrt(jnp.float32(din))
        params[f"w{i+1}"] = jax.random.uniform(kw, (din, dout), jnp.float32, -bound, bound)
        params[f"b{i+1}"] = jax.random.uniform(kb, (1, dout), jnp.float32, -bound, bound)
    bn_dims = [32, 128, 256]
    bn_keys = jax.random.split(jax.random.fold_in(key, 123), 2 * len(bn_dims))
    for i, d in enumerate(bn_dims):
        params[f"g{i+1}"] = 1.0 + 0.1 * jax.random.normal(bn_keys[2 * i], (1, d), jnp.float32)
        params[f"be{i+1}"] = 0.1 * jax.random.normal(bn_keys[2 * i + 1], (1, d), jnp.float32)
    return params


def _ref_bf16_mirror(x, p):
    """Same math as the kernel (bf16 matmul inputs, folded BN, no fc1-3 bias)."""
    bf = jnp.bfloat16

    def bn_relu(y, g, b):
        mu = y.mean(0, keepdims=True)
        var = (y * y).mean(0, keepdims=True) - mu * mu
        scale = g * jax.lax.rsqrt(var + EPS)
        return jnp.maximum(y * scale + (b - mu * scale), 0.0)

    h = jnp.dot(x.astype(bf), p["w1"].astype(bf), preferred_element_type=jnp.float32)
    h = bn_relu(h, p["g1"], p["be1"])
    h = jnp.dot(h.astype(bf), p["w2"].astype(bf), preferred_element_type=jnp.float32)
    h = bn_relu(h, p["g2"], p["be2"])
    h = jnp.dot(h.astype(bf), p["w3"].astype(bf), preferred_element_type=jnp.float32)
    h = bn_relu(h, p["g3"], p["be3"])
    return jnp.dot(h.astype(bf), p["w4"].astype(bf),
                   preferred_element_type=jnp.float32) + p["b4"]


def _ref_f32_pytorch(x, p):
    """Full-precision reference with the exact PyTorch module semantics."""
    def layer(h, w, b, g, be):
        y = h @ w + b
        mu = y.mean(0, keepdims=True)
        var = ((y - mu) ** 2).mean(0, keepdims=True)
        return jnp.maximum((y - mu) / jnp.sqrt(var + EPS) * g + be, 0.0)

    h = layer(x, p["w1"], p["b1"], p["g1"], p["be1"])
    h = layer(h, p["w2"], p["b2"], p["g2"], p["be2"])
    h = layer(h, p["w3"], p["b3"], p["g3"], p["be3"])
    return h @ p["w4"] + p["b4"]


if __name__ == "__main__":
    obs_size = 16
    n_actions = 4
    batch = 8

    key = jax.random.PRNGKey(0)
    kx, kp = jax.random.split(key)
    x = jax.random.normal(kx, (batch, obs_size), jnp.float32)
    params = init_params(kp, obs_size, n_actions)

    q = qfunction_forward(x, params, n_actions)
    jax.block_until_ready(q)

    # Tight check: reference that mirrors the kernel's math exactly.
    q_mirror = _ref_bf16_mirror(x, params)
    assert jnp.allclose(q, q_mirror, atol=1e-3, rtol=1e-3), "mismatch vs bf16-mirror reference"

    # Loose check: full-f32 PyTorch-semantics reference (bf16 matmul rounding only).
    q_f32 = _ref_f32_pytorch(x, params)
    assert jnp.allclose(q, q_f32, atol=5e-2, rtol=5e-2), "mismatch vs f32 PyTorch reference"

    print("KERNEL_OK")
</pallas_src>

<mosaic_0001>
module attributes {stable_mosaic.version = 11 : i64} {
  func.func @qfunction_kernel(%arg0: memref<8x16xbf16, #tpu.memory_space<vmem>>, %arg1: memref<16x32xbf16, #tpu.memory_space<vmem>>, %arg2: memref<32x128xbf16, #tpu.memory_space<vmem>>, %arg3: memref<128x256xbf16, #tpu.memory_space<vmem>>, %arg4: memref<256x128xbf16, #tpu.memory_space<vmem>>, %arg5: memref<8x256xf32, #tpu.memory_space<vmem>>, %arg6: memref<8x128xf32, #tpu.memory_space<vmem>>) attributes {dimension_semantics = [], scalar_prefetch = 0 : i64, scratch_operands = 0 : i64, tpu.core_type = #tpu.core_type<tc>} {
    %c0 = arith.constant 0 : index
    %c0_0 = arith.constant 0 : index
    %0 = vector.load %arg5[%c0, %c0_0] : memref<8x256xf32, #tpu.memory_space<vmem>>, vector<8x256xf32>
    %1 = vector.extract_strided_slice %0 {offsets = [0, 0], sizes = [1, 32], strides = [1, 1]} : vector<8x256xf32> to vector<1x32xf32>
    %2 = vector.extract_strided_slice %0 {offsets = [1, 0], sizes = [1, 32], strides = [1, 1]} : vector<8x256xf32> to vector<1x32xf32>
    %3 = vector.extract_strided_slice %0 {offsets = [2, 0], sizes = [1, 128], strides = [1, 1]} : vector<8x256xf32> to vector<1x128xf32>
    %4 = vector.extract_strided_slice %0 {offsets = [3, 0], sizes = [1, 128], strides = [1, 1]} : vector<8x256xf32> to vector<1x128xf32>
    %5 = vector.extract_strided_slice %0 {offsets = [4, 0], sizes = [1, 256], strides = [1, 1]} : vector<8x256xf32> to vector<1x256xf32>
    %6 = vector.extract_strided_slice %0 {offsets = [5, 0], sizes = [1, 256], strides = [1, 1]} : vector<8x256xf32> to vector<1x256xf32>
    %7 = vector.extract_strided_slice %0 {offsets = [6, 0], sizes = [1, 128], strides = [1, 1]} : vector<8x256xf32> to vector<1x128xf32>
    %c0_1 = arith.constant 0 : index
    %c0_2 = arith.constant 0 : index
    %8 = vector.load %arg0[%c0_1, %c0_2] : memref<8x16xbf16, #tpu.memory_space<vmem>>, vector<8x16xbf16>
    %c0_3 = arith.constant 0 : index
    %c0_4 = arith.constant 0 : index
    %9 = vector.load %arg1[%c0_3, %c0_4] : memref<16x32xbf16, #tpu.memory_space<vmem>>, vector<16x32xbf16>
    %cst = arith.constant dense<0.000000e+00> : vector<8x32xf32>
    %10 = tpu.matmul %8, %9, %cst {dimension_numbers = #tpu.dot_dimension_numbers<[1], [0], [0], [1], [0, 0, 1, 1], [], []>} : vector<8x16xbf16>, vector<16x32xbf16>, vector<8x32xf32> -> vector<8x32xf32>
    %cst_5 = arith.constant dense<0.000000e+00> : vector<32xf32>
    %11 = vector.multi_reduction <add>, %10, %cst_5 [0] : vector<8x32xf32> to vector<32xf32>
    %12 = vector.shape_cast %11 : vector<32xf32> to vector<1x32xf32>
    %cst_6 = arith.constant 8.000000e+00 : f32
    %13 = vector.broadcast %cst_6 : f32 to vector<1x32xf32>
    %14 = arith.divf %12, %13 : vector<1x32xf32>
    %15 = arith.mulf %10, %10 : vector<8x32xf32>
    %cst_7 = arith.constant dense<0.000000e+00> : vector<32xf32>
    %16 = vector.multi_reduction <add>, %15, %cst_7 [0] : vector<8x32xf32> to vector<32xf32>
    %17 = vector.shape_cast %16 : vector<32xf32> to vector<1x32xf32>
    %cst_8 = arith.constant 8.000000e+00 : f32
    %18 = vector.broadcast %cst_8 : f32 to vector<1x32xf32>
    %19 = arith.divf %17, %18 : vector<1x32xf32>
    %20 = arith.mulf %14, %14 : vector<1x32xf32>
    %21 = arith.subf %19, %20 : vector<1x32xf32>
    %cst_9 = arith.constant 9.99999974E-6 : f32
    %22 = vector.broadcast %cst_9 : f32 to vector<1x32xf32>
    %23 = arith.addf %21, %22 : vector<1x32xf32>
    %24 = math.rsqrt %23 : vector<1x32xf32>
    %25 = arith.mulf %1, %24 : vector<1x32xf32>
    %26 = arith.mulf %14, %25 : vector<1x32xf32>
    %27 = arith.subf %2, %26 : vector<1x32xf32>
    %28 = vector.broadcast %25 : vector<1x32xf32> to vector<8x32xf32>
    %29 = arith.mulf %10, %28 : vector<8x32xf32>
    %30 = vector.broadcast %27 : vector<1x32xf32> to vector<8x32xf32>
    %31 = arith.addf %29, %30 : vector<8x32xf32>
    %cst_10 = arith.constant 0.000000e+00 : f32
    %32 = vector.broadcast %cst_10 : f32 to vector<8x32xf32>
    %33 = arith.maximumf %31, %32 : vector<8x32xf32>
    %34 = arith.truncf %33 : vector<8x32xf32> to vector<8x32xbf16>
    %c0_11 = arith.constant 0 : index
    %c0_12 = arith.constant 0 : index
    %35 = vector.load %arg2[%c0_11, %c0_12] : memref<32x128xbf16, #tpu.memory_space<vmem>>, vector<32x128xbf16>
    %cst_13 = arith.constant dense<0.000000e+00> : vector<8x128xf32>
    %36 = tpu.matmul %34, %35, %cst_13 {dimension_numbers = #tpu.dot_dimension_numbers<[1], [0], [0], [1], [0, 0, 1, 1], [], []>} : vector<8x32xbf16>, vector<32x128xbf16>, vector<8x128xf32> -> vector<8x128xf32>
    %cst_14 = arith.constant dense<0.000000e+00> : vector<128xf32>
    %37 = vector.multi_reduction <add>, %36, %cst_14 [0] : vector<8x128xf32> to vector<128xf32>
    %38 = vector.shape_cast %37 : vector<128xf32> to vector<1x128xf32>
    %cst_15 = arith.constant 8.000000e+00 : f32
    %39 = vector.broadcast %cst_15 : f32 to vector<1x128xf32>
    %40 = arith.divf %38, %39 : vector<1x128xf32>
    %41 = arith.mulf %36, %36 : vector<8x128xf32>
    %cst_16 = arith.constant dense<0.000000e+00> : vector<128xf32>
    %42 = vector.multi_reduction <add>, %41, %cst_16 [0] : vector<8x128xf32> to vector<128xf32>
    %43 = vector.shape_cast %42 : vector<128xf32> to vector<1x128xf32>
    %cst_17 = arith.constant 8.000000e+00 : f32
    %44 = vector.broadcast %cst_17 : f32 to vector<1x128xf32>
    %45 = arith.divf %43, %44 : vector<1x128xf32>
    %46 = arith.mulf %40, %40 : vector<1x128xf32>
    %47 = arith.subf %45, %46 : vector<1x128xf32>
    %cst_18 = arith.constant 9.99999974E-6 : f32
    %48 = vector.broadcast %cst_18 : f32 to vector<1x128xf32>
    %49 = arith.addf %47, %48 : vector<1x128xf32>
    %50 = math.rsqrt %49 : vector<1x128xf32>
    %51 = arith.mulf %3, %50 : vector<1x128xf32>
    %52 = arith.mulf %40, %51 : vector<1x128xf32>
    %53 = arith.subf %4, %52 : vector<1x128xf32>
    %54 = vector.broadcast %51 : vector<1x128xf32> to vector<8x128xf32>
    %55 = arith.mulf %36, %54 : vector<8x128xf32>
    %56 = vector.broadcast %53 : vector<1x128xf32> to vector<8x128xf32>
    %57 = arith.addf %55, %56 : vector<8x128xf32>
    %cst_19 = arith.constant 0.000000e+00 : f32
    %58 = vector.broadcast %cst_19 : f32 to vector<8x128xf32>
    %59 = arith.maximumf %57, %58 : vector<8x128xf32>
    %60 = arith.truncf %59 : vector<8x128xf32> to vector<8x128xbf16>
    %c0_20 = arith.constant 0 : index
    %c0_21 = arith.constant 0 : index
    %61 = vector.load %arg3[%c0_20, %c0_21] : memref<128x256xbf16, #tpu.memory_space<vmem>>, vector<128x256xbf16>
    %cst_22 = arith.constant dense<0.000000e+00> : vector<8x256xf32>
    %62 = tpu.matmul %60, %61, %cst_22 {dimension_numbers = #tpu.dot_dimension_numbers<[1], [0], [0], [1], [0, 0, 1, 1], [], []>} : vector<8x128xbf16>, vector<128x256xbf16>, vector<8x256xf32> -> vector<8x256xf32>
    %cst_23 = arith.constant dense<0.000000e+00> : vector<256xf32>
    %63 = vector.multi_reduction <add>, %62, %cst_23 [0] : vector<8x256xf32> to vector<256xf32>
    %64 = vector.shape_cast %63 : vector<256xf32> to vector<1x256xf32>
    %cst_24 = arith.constant 8.000000e+00 : f32
    %65 = vector.broadcast %cst_24 : f32 to vector<1x256xf32>
    %66 = arith.divf %64, %65 : vector<1x256xf32>
    %67 = arith.mulf %62, %62 : vector<8x256xf32>
    %cst_25 = arith.constant dense<0.000000e+00> : vector<256xf32>
    %68 = vector.multi_reduction <add>, %67, %cst_25 [0] : vector<8x256xf32> to vector<256xf32>
    %69 = vector.shape_cast %68 : vector<256xf32> to vector<1x256xf32>
    %cst_26 = arith.constant 8.000000e+00 : f32
    %70 = vector.broadcast %cst_26 : f32 to vector<1x256xf32>
    %71 = arith.divf %69, %70 : vector<1x256xf32>
    %72 = arith.mulf %66, %66 : vector<1x256xf32>
    %73 = arith.subf %71, %72 : vector<1x256xf32>
    %cst_27 = arith.constant 9.99999974E-6 : f32
    %74 = vector.broadcast %cst_27 : f32 to vector<1x256xf32>
    %75 = arith.addf %73, %74 : vector<1x256xf32>
    %76 = math.rsqrt %75 : vector<1x256xf32>
    %77 = arith.mulf %5, %76 : vector<1x256xf32>
    %78 = arith.mulf %66, %77 : vector<1x256xf32>
    %79 = arith.subf %6, %78 : vector<1x256xf32>
    %80 = vector.broadcast %77 : vector<1x256xf32> to vector<8x256xf32>
    %81 = arith.mulf %62, %80 : vector<8x256xf32>
    %82 = vector.broadcast %79 : vector<1x256xf32> to vector<8x256xf32>
    %83 = arith.addf %81, %82 : vector<8x256xf32>
    %cst_28 = arith.constant 0.000000e+00 : f32
    %84 = vector.broadcast %cst_28 : f32 to vector<8x256xf32>
    %85 = arith.maximumf %83, %84 : vector<8x256xf32>
    %86 = arith.truncf %85 : vector<8x256xf32> to vector<8x256xbf16>
    %c0_29 = arith.constant 0 : index
    %c0_30 = arith.constant 0 : index
    %87 = vector.load %arg4[%c0_29, %c0_30] : memref<256x128xbf16, #tpu.memory_space<vmem>>, vector<256x128xbf16>
    %cst_31 = arith.constant dense<0.000000e+00> : vector<8x128xf32>
    %88 = tpu.matmul %86, %87, %cst_31 {dimension_numbers = #tpu.dot_dimension_numbers<[1], [0], [0], [1], [0, 0, 1, 1], [], []>} : vector<8x256xbf16>, vector<256x128xbf16>, vector<8x128xf32> -> vector<8x128xf32>
    %89 = vector.broadcast %7 : vector<1x128xf32> to vector<8x128xf32>
    %90 = arith.addf %88, %89 : vector<8x128xf32>
    %c0_32 = arith.constant 0 : index
    %c0_33 = arith.constant 0 : index
    %91 = vector.load %arg6[%c0_32, %c0_33] : memref<8x128xf32, #tpu.memory_space<vmem>>, vector<8x128xf32>
    tpu.vector_store %arg6[%c0_32, %c0_33], %90 {strides = array<i32>} : memref<8x128xf32, #tpu.memory_space<vmem>>, vector<8x128xf32>,
    return
  }
}

</mosaic_0001>

<bundles_post_ra>
// kernel: tpu_custom_call.1
= control target key start
LH: loop header
LB: loop body
LE: loop exit
PB: predicated region body
PF: predicated region fallthrough
CT: control target
= control target key end

     0   :  { %11 = vsyncpa [#allocation3], 0  ;;  %s1129_s0 = inlined_call_operand.hbm [shape: bf16[8,16], index: 0, kind: input, shape index: {}]   ;;  %s1130_s1 = inlined_call_operand.hbm [shape: bf16[16,32], index: 1, kind: input, shape index: {}]   ;;  %s1131_s2 = inlined_call_operand.hbm [shape: bf16[32,128], index: 2, kind: input, shape index: {}]   ;;  %s1132_s3 = inlined_call_operand.hbm [shape: bf16[128,256], index: 3, kind: input, shape index: {}]   ;;  %s1133_s4 = inlined_call_operand.hbm [shape: bf16[256,128], index: 4, kind: input, shape index: {}]   ;;  %s1134_s5 = inlined_call_operand.vmem [shape: f32[8,256], index: 5, kind: input, shape index: {}]   ;;  %s1135_s6 = inlined_call_operand.hbm [shape: f32[8,128], index: 6, kind: output, shape index: {}]  }
   0x1   :  { %12 = vsyncpa [#allocation6], 0 }
   0x2   :  { %13 = vsyncpa [#allocation9], 0 }
   0x3   :  { %14 = vsyncpa [#allocation4], 0  ;;  %s966_s21 = smov [#allocation5]   ;;  %s826_s25 = scalar_lea.hbm %s1130_s1, 128 }
   0x4   :  { %s30_s22 = sshll.u32 %s966_s21, 4  ;;  %p827_p0 = scmp.ne.s32.totalorder %s1130_s1, %s826_s25  ;;  %s31_s22 = int_to_ptr.vmem [resolvable:$true] %s30_s22 }
   0x5   :  { %p830_p1 = scmp.lt.u32.totalorder %s826_s25, %s1130_s1 }
   0x7   :  { %p832_p2 = pnand %p830_p1, %p827_p0 }
   0x9   :  { %835 = shalt.err (!%p832_p2)
}
   0xa   :  { %s836_s30 = scalar_lea.vmem %s31_s22, 128  ;;  %p841_p4 = scmp.lt.s32.totalorder %s31_s22, %s31_s22 }
   0xb   :  { %p837_p3 = scmp.ne.s32.totalorder %s31_s22, %s836_s30  ;;  %p842_p5 = scmp.lt.s32.totalorder %s836_s30, %s836_s30 }
   0xd   :  { %p843_p6 = por %p842_p5, %p841_p4 }
   0xf   :  { %p844_p7 = pnand %p843_p6, %p837_p3 }
  0x11   :  { %847 = shalt.err (!%p844_p7)
}
  0x12   :  { %s967_s7 = smov 64   ;;  %s968_s8 = smov 4  }
  0x13   :  { %36 = dma.hbm_to_vmem [thread:$0]  %s1130_s1, 128, %s31_s22, [#allocation6], %s967_s7, %s967_s7, %s968_s8  }
  0x14   :  { %s969_s11 = smov [#allocation8]   ;;  %s848_s15 = scalar_lea.hbm %s1132_s3, 2048 }
  0x15   :  { %s54_s12 = sshll.u32 %s969_s11, 4  ;;  %p849_p8 = scmp.ne.s32.totalorder %s1132_s3, %s848_s15  ;;  %s55_s12 = int_to_ptr.vmem [resolvable:$true] %s54_s12 }
  0x16   :  { %p852_p9 = scmp.lt.u32.totalorder %s848_s15, %s1132_s3 }
  0x18   :  { %p854_p10 = pnand %p852_p9, %p849_p8 }
  0x1a   :  { %857 = shalt.err (!%p854_p10)
}
  0x1b   :  { %s858_s20 = scalar_lea.vmem %s55_s12, 2048  ;;  %p863_p12 = scmp.lt.s32.totalorder %s55_s12, %s55_s12 }
  0x1c   :  { %p859_p11 = scmp.ne.s32.totalorder %s55_s12, %s858_s20  ;;  %p864_p13 = scmp.lt.s32.totalorder %s858_s20, %s858_s20 }
  0x1e   :  { %p865_p0 = por %p864_p13, %p863_p12 }
  0x20   :  { %p866_p1 = pnand %p865_p0, %p859_p11 }
  0x22   :  { %869 = shalt.err (!%p866_p1)
}
  0x23   :  { %s970_s1 = smov 128   ;;  %s971_s21 = smov 8  }
  0x24   :  { %60 = dma.hbm_to_vmem [thread:$0]  %s1132_s3, 2048, %s55_s12, [#allocation9], %s970_s1, %s970_s1, %s971_s21  }
  0x25   :  { %s972_s24 = smov [#allocation2]   ;;  %s973_s26 = smov [#allocation7]  }
  0x26   :  { %s21_s25 = sshll.u32 %s972_s24, 4  ;;  %s42_s27 = sshll.u32 %s973_s26, 4  ;;  %s22_s25 = int_to_ptr.vmem [resolvable:$true] %s21_s25  ;;  %s1041_s27 = int_to_ptr.vmem [resolvable:$true] %s42_s27 }
  0x27   :  { %s870_s30 = scalar_lea.hbm %s1129_s0, 64 }
  0x28   :  { %p871_p2 = scmp.ne.s32.totalorder %s1129_s0, %s870_s30  ;;  %p874_p3 = scmp.lt.u32.totalorder %s870_s30, %s1129_s0 }
  0x2a   :  { %p876_p4 = pnand %p874_p3, %p871_p2 }
  0x2c   :  { %879 = shalt.err (!%p876_p4)
}
  0x2d   :  { %s880_s3 = scalar_lea.vmem %s22_s25, 64  ;;  %p885_p6 = scmp.lt.s32.totalorder %s22_s25, %s22_s25 }
  0x2e   :  { %p881_p5 = scmp.ne.s32.totalorder %s22_s25, %s880_s3  ;;  %p886_p7 = scmp.lt.s32.totalorder %s880_s3, %s880_s3 }
  0x30   :  { %p887_p8 = por %p886_p7, %p885_p6 }
  0x32   :  { %p888_p9 = pnand %p887_p8, %p881_p5 }
  0x34   :  { %891 = shalt.err (!%p888_p9)
}
  0x35   :  { %24 = dma.hbm_to_vmem [thread:$0]  %s1129_s0, 64, %s22_s25, [#allocation3]  }
  0x36   :  { %s892_s17 = scalar_lea.hbm %s1131_s2, 256 }
  0x37   :  { %p893_p10 = scmp.ne.s32.totalorder %s1131_s2, %s892_s17  ;;  %p896_p11 = scmp.lt.u32.totalorder %s892_s17, %s1131_s2 }
  0x39   :  { %p898_p12 = pnand %p896_p11, %p893_p10 }
  0x3b   :  { %901 = shalt.err (!%p898_p12)
}
  0x3c   :  { %s902_s21 = scalar_lea.vmem %s1041_s27, 256  ;;  %p907_p0 = scmp.lt.s32.totalorder %s1041_s27, %s1041_s27 }
  0x3d   :  { %p903_p13 = scmp.ne.s32.totalorder %s1041_s27, %s902_s21  ;;  %p908_p1 = scmp.lt.s32.totalorder %s902_s21, %s902_s21 }
  0x3f   :  { %p909_p2 = por %p908_p1, %p907_p0 }
  0x41   :  { %p910_p3 = pnand %p909_p2, %p903_p13 }
  0x43   :  { %913 = shalt.err (!%p910_p3)
}
  0x44   :  { %48 = dma.hbm_to_vmem [thread:$0]  %s1131_s2, 256, %s1041_s27, [#allocation6], %s967_s7, %s967_s7, %s968_s8  }
  0x45   :  { %s974_s23 = smov [#allocation10]   ;;  %s914_s28 = scalar_lea.hbm %s1133_s4, 2048 }
  0x46   :  { %s66_s24 = sshll.u32 %s974_s23, 4  ;;  %p915_p4 = scmp.ne.s32.totalorder %s1133_s4, %s914_s28  ;;  %s67_s24 = int_to_ptr.vmem [resolvable:$true] %s66_s24 }
  0x47   :  { %p918_p5 = scmp.lt.u32.totalorder %s914_s28, %s1133_s4 }
  0x49   :  { %p920_p6 = pnand %p918_p5, %p915_p4 }
  0x4b   :  { %923 = shalt.err (!%p920_p6)
}
  0x4c   :  { %s924_s11 = scalar_lea.vmem %s67_s24, 2048  ;;  %p929_p8 = scmp.lt.s32.totalorder %s67_s24, %s67_s24 }
  0x4d   :  { %p925_p7 = scmp.ne.s32.totalorder %s67_s24, %s924_s11  ;;  %p930_p9 = scmp.lt.s32.totalorder %s924_s11, %s924_s11 }
  0x4f   :  { %p931_p10 = por %p930_p9, %p929_p8 }
  0x51   :  { %p932_p11 = pnand %p931_p10, %p925_p7 }
  0x53   :  { %935 = shalt.err (!%p932_p11)
}
  0x54   :  { %72 = dma.hbm_to_vmem [thread:$0]  %s1133_s4, 2048, %s67_s24, [#allocation9], %s967_s7, %s967_s7, %s968_s8  }
  0x55   :  { %958 = dma.done.wait [#allocation3], 64  }
  0x56   :  { %959 = vsyncadd [#allocation3], 4294967232 }
  0x57   :  { %960 = dma.done.wait [#allocation6], 384  }
  0x58   :  { %961 = vsyncadd [#allocation6], 4294966912 }
  0x59   :  { %962 = dma.done.wait [#allocation9], 4096  }
  0x5a   :  { %963 = vsyncadd [#allocation9], 4294963200  ;;  %v975_v0 = vmov 0.0   ;;  %vm976_vm0 = vmmov 0   ;;  %v775_v1 = vld [vmem:[#allocation5] sm:$0xff]   ;;  %vm102_vm1 = vcmask 130048   ;;  %v175_v29 = vlaneseq }
  0x5b   :  { %748 = vmatprep.subr.bf16.mxu0 %v975_v0  ;;  %750 = vmatprep.mubr.msk.bf16.mxu0 %vm976_vm0, %v975_v0  ;;  %v93_v2 = vld [vmem:[#allocation2] sm:$0xf]  ;;  %v776_v3 = vld [vmem:[#allocation7] sm:$0xff]   ;;  %v777_v4 = vld [vmem:[#allocation7 + $0x8] sm:$0xff]   ;;  %vm146_vm2 = vcmask 261120   ;;  %v977_v61 = vmov 0  }
  0x5c   :  { %754 = vmatprep.subr.bf16.mxu1 %v975_v0  ;;  %758 = vmatprep.mubr.msk.bf16.mxu1 %vm976_vm0, %v975_v0  ;;  %v1092_v30 = vshrl.u32 %v175_v29, 7  ;;  %v1097_v31 = vld [vmem:[%s1134_s5] sm:$0xff]  ;;  %v780_v45 = vld [vmem:[#allocation8 + $0x4] ss:$8 sps:$4 sm:$0xff]   ;;  %v778_v46 = vld [vmem:[#allocation8] ss:$8 sps:$4 sm:$0xff]  }
  0x5d   :  { %749 = vmatpush3.bf16.msra.mxu0 %v775_v1  ;;  %755 = vmatpush3.bf16.msra.mxu1 %v776_v3  ;;  %v783_v47 = vld [vmem:[#allocation8 + $0x14] ss:$8 sps:$4 sm:$0xff]   ;;  %v781_v48 = vld [vmem:[#allocation8 + $0x10] ss:$8 sps:$4 sm:$0xff]   ;;  %v786_v49 = vld [vmem:[#allocation8 + $0x24] ss:$8 sps:$4 sm:$0xff]  }
  0x5e   :  { %756 = vmatprep.subr.bf16.mxu1 %v975_v0  ;;  %v177_v34 = vsub.s32 0, %v1092_v30  ;;  %v182_v38 = vsub.s32 1, %v1092_v30  ;;  %379 = vmatprep.subr.bf16.mxu0 %v780_v45  ;;  %v784_v50 = vld [vmem:[#allocation8 + $0x20] ss:$8 sps:$4 sm:$0xff]   ;;  %v789_v51 = vld [vmem:[#allocation8 + $0x34] ss:$8 sps:$4 sm:$0xff]  }
  0x5f   :  { %v787_v52 = vld [vmem:[#allocation8 + $0x30] ss:$8 sps:$4 sm:$0xff]   ;;  %v792_v53 = vld [vmem:[#allocation8 + $0x44] ss:$8 sps:$4 sm:$0xff]   ;;  %v790_v54 = vld [vmem:[#allocation8 + $0x40] ss:$8 sps:$4 sm:$0xff]  }
  0x60   :  { %751 = vmatmul.mubr.msk.bf16.vlgmr.msra.gmra.mrb[0].mxu0 %vm102_vm1, %v93_v2  ;;  %v795_v55 = vld [vmem:[#allocation8 + $0x54] ss:$8 sps:$4 sm:$0xff]   ;;  %v793_v56 = vld [vmem:[#allocation8 + $0x50] ss:$8 sps:$4 sm:$0xff]   ;;  %v798_v57 = vld [vmem:[#allocation8 + $0x64] ss:$8 sps:$4 sm:$0xff]  }
  0x61   :  { %757 = vmatpush3.bf16.msra.mxu1 %v777_v4  ;;  %380 = vmatpush1.bf16.msra.mxu0 %v778_v46  ;;  %v796_v58 = vld [vmem:[#allocation8 + $0x60] ss:$8 sps:$4 sm:$0xff]   ;;  %v799_v59 = vld [vmem:[#allocation8 + $0x70] ss:$8 sps:$4 sm:$0xff]   ;;  %v801_v60 = vld [vmem:[#allocation8 + $0x74] ss:$8 sps:$4 sm:$0xff]  }
  0x62   :  { %381 = vmatprep.subr.bf16.mxu0 %v783_v47  ;;  %411 = vmatprep.mubr.bf16.mxu0 %v977_v61  ;;  %v812_v45 = vld [vmem:[#allocation10 + $0x68] sm:$0xff]   ;;  %v814_v47 = vld [vmem:[#allocation10 + $0x70] sm:$0xff]  }
  0x63   :  { %v813_v46 = vld [vmem:[#allocation10 + $0x28] sm:$0xff]  }
  0x65   :  { %382 = vmatpush1.bf16.msra.mxu0 %v781_v48  ;;  %v815_v48 = vld [vmem:[#allocation10 + $0x30] sm:$0xff]  }
  0x66   :  { %383 = vmatprep.subr.bf16.mxu0 %v786_v49  ;;  %v816_v49 = vld [vmem:[#allocation10 + $0x78] sm:$0xff]  }
  0x69   :  { %384 = vmatpush1.bf16.msra.mxu0 %v784_v50  ;;  %v817_v50 = vld [vmem:[#allocation10 + $0x38] sm:$0xff]  }
  0x6a   :  { %385 = vmatprep.subr.bf16.mxu0 %v789_v51 }
  0x6d   :  { %386 = vmatpush1.bf16.msra.mxu0 %v787_v52 }
  0x6e   :  { %387 = vmatprep.subr.bf16.mxu0 %v792_v53 }
  0x71   :  { %388 = vmatpush1.bf16.msra.mxu0 %v790_v54 }
  0x72   :  { %389 = vmatprep.subr.bf16.mxu0 %v795_v55 }
  0x75   :  { %390 = vmatpush1.bf16.msra.mxu0 %v793_v56 }
  0x76   :  { %391 = vmatprep.subr.bf16.mxu0 %v798_v57 }
  0x79   :  { %392 = vmatpush1.bf16.msra.mxu0 %v796_v58 }
  0x7a   :  { %393 = vmatprep.subr.bf16.mxu0 %v801_v60 }
  0x7d   :  { %394 = vmatpush1.bf16.msra.mxu0 %v799_v59 }
 0x133   :  { %v140_v5 = vpop.f32.mrb[0].mxu0 }
 0x134   :  { %v147_v6 = vsel %vm146_vm2, %v140_v5, 0.0  ;;  %v156_v7 = vmul.f32 %v140_v5, %v140_v5  ;;  %v752_v8 = vpop.f32.mrb[1].mxu0 }
 0x135   :  { %v148_v9 = vrot.slane %v147_v6, 4  ;;  %v143_v10 = vpop.f32.mrb[2].mxu0 }
 0x136   :  { %v157_v11 = vsel %vm146_vm2, %v156_v7, 0.0  ;;  %v753_v12 = vpop.f32.mrb[3].mxu0 }
 0x137   :  { %v149_v13 = vadd.f32 %v148_v9, %v147_v6  ;;  %v158_v14 = vrot.slane %v157_v11, 4 }
 0x139   :  { %v150_v15 = vrot.slane %v149_v13, 2  ;;  %v159_v16 = vadd.f32 %v158_v14, %v157_v11 }
 0x13b   :  { %v151_v17 = vadd.f32 %v150_v15, %v149_v13  ;;  %v160_v18 = vrot.slane %v159_v16, 2 }
 0x13d   :  { %v152_v19 = vrot.slane %v151_v17, 1  ;;  %v161_v20 = vadd.f32 %v160_v18, %v159_v16 }
 0x13f   :  { %v153_v21 = vadd.f32 %v152_v19, %v151_v17  ;;  %v162_v22 = vrot.slane %v161_v20, 1 }
 0x141   :  { %v155_v23 = vmul.f32 0.125, %v153_v21  ;;  %v163_v24 = vadd.f32 %v162_v22, %v161_v20  ;;  %v273_v22 = vsub.s32 2, %v1092_v30 }
 0x143   :  { %v164_v25 = vmul.f32 0.125, %v163_v24  ;;  %v165_v26 = vmul.f32 %v155_v23, %v155_v23 }
 0x145   :  { %v166_v27 = vsub.f32 %v164_v25, %v165_v26  ;;  %v278_v26 = vsub.s32 3, %v1092_v30 }
 0x147   :  { %v167_v28 = vadd.f32 1e-05, %v166_v27 }
 0x149   :  { %818 = vrsqrt.f32 %v167_v28 }
 0x153   :  { %v819_v32 = vpop.eup %818 }
 0x154   :  { %v169_v33 = vmul.f32 %v819_v32, %v1097_v31 }
 0x156   :  { %v170_v35 = vmul.f32 %v169_v33, %v155_v23  ;;  %v178_v37 = vrot.slane %v169_v33, %v177_v34 }
 0x158   :  { %v172_v36 = vrot.slane %v170_v35, 7  ;;  %v179_v40 = vmul.f32 %v178_v37, %v140_v5  ;;  %v802_v35 = vld [vmem:[#allocation10 + $0x40] sm:$0xff]   ;;  %v804_v37 = vld [vmem:[#allocation10 + $0x48] sm:$0xff]  }
 0x159   :  { %726 = vmatprep.subr.bf16.mxu1 %v802_v35 }
 0x15a   :  { %v174_v39 = vsub.f32 %v1097_v31, %v172_v36  ;;  %v803_v36 = vld [vmem:[#allocation10] sm:$0xff]  }
 0x15c   :  { %v183_v41 = vrot.slane %v174_v39, %v182_v38  ;;  %v805_v38 = vld [vmem:[#allocation10 + $0x8] sm:$0xff]   ;;  %v806_v39 = vld [vmem:[#allocation10 + $0x50] sm:$0xff]  }
 0x15e   :  { %v184_v42 = vadd.f32 %v183_v41, %v179_v40  ;;  %v807_v40 = vld [vmem:[#allocation10 + $0x10] sm:$0xff]   ;;  %v808_v41 = vld [vmem:[#allocation10 + $0x58] sm:$0xff]  }
 0x160   :  { %v185_v43 = vmax.f32 %v184_v42, 0.0  ;;  %v809_v42 = vld [vmem:[#allocation10 + $0x18] sm:$0xff]  }
 0x162   :  { %v186_v44 = vpack.c.bf16 %v185_v43, %v185_v43  ;;  %v810_v43 = vld [vmem:[#allocation10 + $0x60] sm:$0xff]  }
 0x164   :  { %759 = vmatmul.mubr.msk.bf16.vlgmr.msra.gmra.mrb[0].mxu1 %vm146_vm2, %v186_v44  ;;  %v811_v44 = vld [vmem:[#allocation10 + $0x20] sm:$0xff]  }
 0x165   :  { %727 = vmatpush3.bf16.msra.mxu1 %v803_v36 }
 0x166   :  { %728 = vmatprep.subr.bf16.mxu1 %v804_v37 }
 0x169   :  { %729 = vmatpush3.bf16.msra.mxu1 %v805_v38 }
 0x16a   :  { %730 = vmatprep.subr.bf16.mxu1 %v806_v39  ;;  %v482_v39 = vsub.s32 5, %v1092_v30 }
 0x16d   :  { %731 = vmatpush3.bf16.msra.mxu1 %v807_v40 }
 0x16e   :  { %732 = vmatprep.subr.bf16.mxu1 %v808_v41 }
 0x171   :  { %733 = vmatpush3.bf16.msra.mxu1 %v809_v42 }
 0x172   :  { %734 = vmatprep.subr.bf16.mxu1 %v810_v43 }
 0x175   :  { %735 = vmatpush3.bf16.msra.mxu1 %v811_v44 }
 0x176   :  { %736 = vmatprep.subr.bf16.mxu1 %v812_v45 }
 0x179   :  { %737 = vmatpush3.bf16.msra.mxu1 %v813_v46 }
 0x17a   :  { %738 = vmatprep.subr.bf16.mxu1 %v814_v47 }
 0x17d   :  { %739 = vmatpush3.bf16.msra.mxu1 %v815_v48 }
 0x17e   :  { %740 = vmatprep.subr.bf16.mxu1 %v816_v49 }
 0x181   :  { %741 = vmatpush3.bf16.msra.mxu1 %v817_v50 }
 0x237   :  { %v240_v62 = vpop.f32.mrb[0].mxu1 }
 0x238   :  { %v246_v63 = vrot.slane %v240_v62, 4  ;;  %v253_v0 = vmul.f32 %v240_v62, %v240_v62  ;;  %v760_v1 = vpop.f32.mrb[1].mxu1 }
 0x239   :  { %v243_v2 = vpop.f32.mrb[2].mxu1 }
 0x23a   :  { %v247_v3 = vadd.f32 %v246_v63, %v240_v62  ;;  %v254_v4 = vrot.slane %v253_v0, 4  ;;  %v761_v5 = vpop.f32.mrb[3].mxu1 }
 0x23c   :  { %v248_v6 = vrot.slane %v247_v3, 2  ;;  %v255_v7 = vadd.f32 %v254_v4, %v253_v0 }
 0x23e   :  { %v249_v8 = vadd.f32 %v248_v6, %v247_v3  ;;  %v256_v9 = vrot.slane %v255_v7, 2 }
 0x240   :  { %v250_v10 = vrot.slane %v249_v8, 1  ;;  %v257_v11 = vadd.f32 %v256_v9, %v255_v7 }
 0x242   :  { %v251_v12 = vadd.f32 %v250_v10, %v249_v8  ;;  %v258_v13 = vrot.slane %v257_v11, 1 }
 0x244   :  { %v252_v14 = vmul.f32 0.125, %v251_v12  ;;  %v259_v15 = vadd.f32 %v258_v13, %v257_v11 }
 0x246   :  { %v260_v16 = vmul.f32 0.125, %v259_v15  ;;  %v261_v17 = vmul.f32 %v252_v14, %v252_v14 }
 0x248   :  { %v262_v18 = vsub.f32 %v260_v16, %v261_v17 }
 0x24a   :  { %v263_v19 = vadd.f32 1e-05, %v262_v18 }
 0x24c   :  { %820 = vrsqrt.f32 %v263_v19 }
 0x256   :  { %v821_v20 = vpop.eup %820 }
 0x257   :  { %v265_v21 = vmul.f32 %v821_v20, %v1097_v31 }
 0x259   :  { %v266_v23 = vmul.f32 %v265_v21, %v252_v14  ;;  %v274_v25 = vrot.slane %v265_v21, %v273_v22 }
 0x25b   :  { %v268_v24 = vrot.slane %v266_v23, 7  ;;  %v275_v28 = vmul.f32 %v274_v25, %v240_v62 }
 0x25d   :  { %v270_v27 = vsub.f32 %v1097_v31, %v268_v24 }
 0x25f   :  { %v279_v29 = vrot.slane %v270_v27, %v278_v26  ;;  %v92_v27 = vld [vmem:[%s1134_s5 + $0x8] sm:$0xff]  ;;  %s978_s5 = smov [#allocation11]  }
 0x260   :  { %s673_s3 = sshll.u32 %s978_s5, 4  ;;  %s674_s3 = int_to_ptr.vmem [resolvable:$true] %s673_s3 }
 0x261   :  { %v280_v32 = vadd.f32 %v279_v29, %v275_v28  ;;  %s936_s12 = scalar_lea.vmem %s674_s3, 128  ;;  %p941_p13 = scmp.lt.s32.totalorder %s674_s3, %s674_s3 }
 0x262   :  { %p937_p12 = scmp.ne.s32.totalorder %s674_s3, %s936_s12  ;;  %p942_p0 = scmp.lt.s32.totalorder %s936_s12, %s936_s12 }
 0x263   :  { %v281_v33 = vmax.f32 %v280_v32, 0.0 }
 0x264   :  { %p943_p1 = por %p942_p0, %p941_p13 }
 0x265   :  { %v282_v34 = vpack.c.bf16 %v281_v33, %v281_v33  ;;  %v472_v33 = vsub.s32 4, %v1092_v30 }
 0x266   :  { %p944_p2 = pnand %p943_p1, %p937_p12 }
 0x267   :  { %412 = vmatmul.mubr.bf16.vlgmr.msra.gmra.mrb[4].mxu0 %v282_v34 }
 0x33a   :  { %v413_v51 = vpop.f32.mrb[4].mxu0 }
 0x33b   :  { %v420_v52 = vrot.slane %v413_v51, 4  ;;  %v434_v53 = vmul.f32 %v413_v51, %v413_v51  ;;  %v415_v54 = vpop.f32.mrb[5].mxu0 }
 0x33c   :  { %v426_v55 = vrot.slane %v415_v54, 4  ;;  %v435_v56 = vmul.f32 %v415_v54, %v415_v54  ;;  %v417_v57 = vpop.f32.mrb[6].mxu0 }
 0x33d   :  { %v421_v58 = vadd.f32 %v420_v52, %v413_v51  ;;  %v436_v59 = vrot.slane %v434_v53, 4  ;;  %v418_v60 = vpop.f32.mrb[7].mxu0 }
 0x33e   :  { %v427_v61 = vadd.f32 %v426_v55, %v415_v54  ;;  %v442_v62 = vrot.slane %v435_v56, 4 }
 0x33f   :  { %v422_v63 = vrot.slane %v421_v58, 2  ;;  %v437_v0 = vadd.f32 %v436_v59, %v434_v53 }
 0x340   :  { %v428_v1 = vrot.slane %v427_v61, 2  ;;  %v443_v2 = vadd.f32 %v442_v62, %v435_v56  ;;  %v528_v56 = vsub.s32 6, %v1092_v30 }
 0x341   :  { %v423_v3 = vadd.f32 %v422_v63, %v421_v58  ;;  %v438_v4 = vrot.slane %v437_v0, 2 }
 0x342   :  { %v429_v5 = vadd.f32 %v428_v1, %v427_v61  ;;  %v444_v6 = vrot.slane %v443_v2, 2  ;;  %v529_v58 = vrot.slane %v1097_v31, %v528_v56 }
 0x343   :  { %v424_v7 = vrot.slane %v423_v3, 1  ;;  %v439_v8 = vadd.f32 %v438_v4, %v437_v0 }
 0x344   :  { %v430_v9 = vrot.slane %v429_v5, 1  ;;  %v445_v10 = vadd.f32 %v444_v6, %v443_v2 }
 0x345   :  { %v425_v11 = vadd.f32 %v424_v7, %v423_v3  ;;  %v440_v12 = vrot.slane %v439_v8, 1 }
 0x346   :  { %v431_v13 = vadd.f32 %v430_v9, %v429_v5  ;;  %v446_v14 = vrot.slane %v445_v10, 1 }
 0x347   :  { %v432_v15 = vmul.f32 0.125, %v425_v11  ;;  %v441_v16 = vadd.f32 %v440_v12, %v439_v8 }
 0x348   :  { %v433_v17 = vmul.f32 0.125, %v431_v13  ;;  %v447_v18 = vadd.f32 %v446_v14, %v445_v10 }
 0x349   :  { %v448_v19 = vmul.f32 0.125, %v441_v16  ;;  %v450_v20 = vmul.f32 %v432_v15, %v432_v15 }
 0x34a   :  { %v449_v21 = vmul.f32 0.125, %v447_v18  ;;  %v451_v22 = vmul.f32 %v433_v17, %v433_v17 }
 0x34b   :  { %v452_v23 = vsub.f32 %v448_v19, %v450_v20 }
 0x34c   :  { %v453_v24 = vsub.f32 %v449_v21, %v451_v22 }
 0x34d   :  { %v454_v25 = vadd.f32 1e-05, %v452_v23 }
 0x34e   :  { %v455_v26 = vadd.f32 1e-05, %v453_v24 }
 0x34f   :  { %822 = vrsqrt.f32 %v454_v25 }
 0x350   :  { %824 = vrsqrt.f32 %v455_v26 }
 0x359   :  { %v823_v28 = vpop.eup %822 }
 0x35a   :  { %v825_v29 = vpop.eup %824  ;;  %v458_v32 = vmul.f32 %v823_v28, %v1097_v31 }
 0x35b   :  { %v459_v34 = vmul.f32 %v825_v29, %v92_v27 }
 0x35c   :  { %v460_v35 = vmul.f32 %v458_v32, %v432_v15  ;;  %v473_v38 = vrot.slane %v458_v32, %v472_v33 }
 0x35d   :  { %v461_v36 = vmul.f32 %v459_v34, %v433_v17  ;;  %v477_v40 = vrot.slane %v459_v34, %v472_v33 }
 0x35e   :  { %v464_v37 = vrot.slane %v460_v35, 7  ;;  %v478_v44 = vmul.f32 %v473_v38, %v413_v51 }
 0x35f   :  { %v465_v41 = vrot.slane %v461_v36, 7  ;;  %v479_v46 = vmul.f32 %v477_v40, %v415_v54 }
 0x360   :  { %v468_v42 = vsub.f32 %v1097_v31, %v464_v37 }
 0x361   :  { %v469_v43 = vsub.f32 %v92_v27, %v465_v41 }
 0x362   :  { %v483_v45 = vrot.slane %v468_v42, %v482_v39 }
 0x363   :  { %v487_v47 = vrot.slane %v469_v43, %v482_v39 }
 0x364   :  { %v488_v48 = vadd.f32 %v483_v45, %v478_v44 }
 0x365   :  { %v489_v49 = vadd.f32 %v487_v47, %v479_v46 }
 0x366   :  { %v490_v50 = vmax.f32 %v488_v48, 0.0 }
 0x367   :  { %v491_v52 = vmax.f32 %v489_v49, 0.0 }
 0x368   :  { %v492_v55 = vpack.c.bf16 %v490_v50, %v490_v50 }
 0x369   :  { %v493_v53 = vpack.c.bf16 %v491_v52, %v491_v52 }
 0x36b   :  { %658 = vmatprep.mubr.bf16.mxu1 %v493_v53 }
 0x36c   :  { %659 = vmatmul.mubr.bf16.vlgmr.msra.gmra.mrb[4].mxu1 %v492_v55 }
 0x43f   :  { %v742_v57 = vpop.f32.mrb[4].mxu1 }
 0x440   :  { %v743_v59 = vpop.f32.mrb[5].mxu1 }
 0x441   :  { %v744_v51 = vadd.f32 %v743_v59, %v742_v57  ;;  %v745_v60 = vpop.f32.mrb[6].mxu1 }
 0x442   :  { %v746_v54 = vpop.f32.mrb[7].mxu1 }
 0x443   :  { %v661_v61 = vadd.f32 %v744_v51, %v529_v58 }
 0x445   :  { %666 = vst [vmem:[#allocation11] sm:$0xff] %v661_v61 }
 0x446   :  { %947 = shalt.err (!%p944_p2)
}
 0x447   :  { %s948_s16 = scalar_lea.hbm %s1135_s6, 128 }
 0x448   :  { %p949_p3 = scmp.ne.s32.totalorder %s1135_s6, %s948_s16  ;;  %p952_p4 = scmp.lt.u32.totalorder %s948_s16, %s1135_s6 }
 0x44a   :  { %p954_p5 = pnand %p952_p4, %p949_p3 }
 0x44c   :  { %957 = shalt.err (!%p954_p5)
}
 0x44d   :  { %676 = dma.vmem_to_hbm [thread:$0]  %s674_s3, 128, %s1135_s6, [#allocation4]  }
 0x44e   :  { %964 = dma.done.wait [#allocation4], 128  }
 0x44f   :  { %965 = vsyncadd [#allocation4], 4294967168 }
 0x450   :  { %680 = vsyncpa [#allocation3], 1 }
 0x451   :  { %681 = vsyncpa [#allocation6], 1 }
 0x452   :  { %682 = vsyncpa [#allocation9], 1 }
 0x453   :  { %683 = vsyncpa [#allocation4], 1 }

</bundles_post_ra>
